<compile_context>
chip_gen: v7x
topology: tpu7x:2x2x1
jax: 0.10.0
libtpu: 0.0.40
codegen_flags: <defaults>
</compile_context>

<pallas_src>
import functools

import jax
import jax.numpy as jnp
from jax.experimental import pallas as pl
from jax.experimental.pallas import tpu as pltpu


def _nan_flag_kernel(x_ref, flag_ref, *, row_tile, rem):
    """Writes a lane-dense per-block NaN flag for one (row_tile, lane) tile.

    `rem` is the number of valid rows in the *last* grid block (== row_tile
    when the row count divides evenly).  Both are static Python ints.
    """

    def reduce_store(mask, nrows):
        # Partial OR-reduce that stays on the VPU: group rows by sublane tile
        # (8 rows) and OR the groups together; store the (8, lane) result and
        # let the wrapper do the final cross-lane collapse.  Falls back to a
        # full jnp.any for row counts not divisible by 8 (tiny tiles only).
        if nrows % 8 == 0:
            grouped = mask.reshape(nrows // 8, 8, mask.shape[-1])
            flag_ref[0] = jnp.any(grouped, axis=0).astype(jnp.int32)
        else:
            flag_ref[...] = jnp.broadcast_to(
                jnp.any(mask).astype(jnp.int32), flag_ref.shape
            )

    if rem == row_tile:
        # Rows divide evenly: every block takes the unmasked fast path.
        reduce_store(jnp.isnan(x_ref[...]), row_tile)
    else:
        last = pl.program_id(0) == pl.num_programs(0) - 1

        @pl.when(jnp.logical_not(last))
        def _():
            reduce_store(jnp.isnan(x_ref[...]), row_tile)

        @pl.when(last)
        def _():
            # Only `rem` rows of the final block are real data; slice them
            # statically instead of masking (garbage rows are never read).
            reduce_store(jnp.isnan(x_ref[:rem, :]), rem)


def _nan_scan_2d(x2d, target_block_bytes):
    """Pallas scan of a lane-dense (rows, lane) array; returns a 0-d bool."""
    rows, lane = x2d.shape
    itemsize = jnp.dtype(x2d.dtype).itemsize
    # Sublane granule per dtype width (f32: 8, bf16: 16, int8/fp8: 32).
    sub = {4: 8, 2: 16, 1: 32}.get(itemsize, 8)

    # ~target_block_bytes per block, rounded down to the sublane granule.
    tile_rows = max(sub, (target_block_bytes // (lane * itemsize)) // sub * sub)
    row_tile = rows if tile_rows >= rows else tile_rows
    grid_rows = pl.cdiv(rows, row_tile)
    rem = rows - (grid_rows - 1) * row_tile  # valid rows in the last block

    kernel = functools.partial(_nan_flag_kernel, row_tile=row_tile, rem=rem)

    flags = pl.pallas_call(
        kernel,
        out_shape=jax.ShapeDtypeStruct((grid_rows, 8, lane), jnp.int32),
        grid_spec=pltpu.PrefetchScalarGridSpec(
            num_scalar_prefetch=0,
            grid=(grid_rows,),
            in_specs=[pl.BlockSpec((row_tile, lane), lambda i: (i, 0))],
            # One private (8, lane) flag tile per grid step -> no revisiting,
            # so the grid axis is fully parallel (megacore-shardable).
            out_specs=pl.BlockSpec((1, 8, lane), lambda i: (i, 0, 0)),
        ),
        compiler_params=pltpu.CompilerParams(
            dimension_semantics=("parallel",),
        ),
        cost_estimate=pl.CostEstimate(
            flops=rows * lane,
            transcendentals=0,
            bytes_accessed=rows * lane * itemsize + grid_rows * 8 * lane * 4,
        ),
    )(x2d)

    return jnp.max(flags) > 0


@functools.partial(jax.jit, static_argnames=("target_block_bytes",))
def tensor_has_nan(x, *, target_block_bytes=4 * 1024 * 1024):
    """0-d bool: does `x` contain any NaN?  Bulk of the work is a Pallas scan."""
    if not jnp.issubdtype(x.dtype, jnp.inexact):
        return jnp.zeros((), dtype=jnp.bool_)  # integer tensors are never NaN
    total = x.size
    if total == 0:
        return jnp.zeros((), dtype=jnp.bool_)

    # Lane-dense flattening: lane is a multiple of 128 dividing the element
    # count exactly, so there is no padding copy and no masked partial loads.
    lane = next((c for c in (512, 256, 128) if total % c == 0), None)
    x_flat = x.reshape(-1)
    if lane is not None:
        return _nan_scan_2d(x_flat.reshape(-1, lane), target_block_bytes)

    # Non-128-divisible element count: scan the largest 512-divisible prefix
    # lane-dense through the kernel and OR in the (<512-element) tail on the
    # wrapper side.  TODO(synk): the prefix slice may materialize a copy for
    # non-default input layouts; acceptable only because this path is rare.
    lane = 512
    n_bulk = (total // lane) * lane
    tail_has_nan = jnp.any(jnp.isnan(x_flat[n_bulk:]))
    if n_bulk == 0:
        return tail_has_nan
    bulk_has_nan = _nan_scan_2d(x_flat[:n_bulk].reshape(-1, lane), target_block_bytes)
    return jnp.logical_or(bulk_has_nan, tail_has_nan)


def print_layer_forward(x, layer_id, *, target_block_bytes=4 * 1024 * 1024):
    """Pallas implementation of PrintLayer.forward: print NaN status, return x.

    The print requires a blocking device->host readback of the flag, exactly
    like the original debug module; this makes the wrapper non-jittable.
    """
    has_nan = bool(
        jax.device_get(tensor_has_nan(x, target_block_bytes=target_block_bytes))
    )
    if layer_id:
        print("AFTER", has_nan)
    else:
        print("BEFORE ACT", has_nan)
    # Pure pass-through: return the original array, no copy.
    return x


if __name__ == "__main__":
    key = jax.random.PRNGKey(0)
    x = jax.random.normal(key, (2, 4, 16, 16), dtype=jnp.float32)  # NCHW

    # id=0 path ("BEFORE ACT"), clean input.
    y = print_layer_forward(x, layer_id=0)
    y = jax.block_until_ready(y)
    assert y.shape == x.shape and y.dtype == x.dtype
    assert bool(jnp.all(y == x))
    assert not bool(jax.device_get(tensor_has_nan(x)))

    # id=1 path ("AFTER"), NaN injected, exercising the flag.
    x_nan = x.at[1, 2, 3, 4].set(jnp.nan)
    y_nan = print_layer_forward(x_nan, layer_id=1)
    y_nan = jax.block_until_ready(y_nan)
    assert bool(jnp.isnan(y_nan[1, 2, 3, 4]))
    assert bool(jax.device_get(tensor_has_nan(x_nan)))

    # Multi-block grid with a partial last block (rows=44, row_tile=8, rem=4):
    # exercises the pl.when-gated last-block path and the structured reduce.
    z = jax.random.normal(jax.random.PRNGKey(1), (44, 512), dtype=jnp.float32)
    assert not bool(jax.device_get(tensor_has_nan(z, target_block_bytes=16 * 1024)))
    z_nan = z.at[43, 100].set(jnp.nan)   # NaN inside the partial last block
    assert bool(jax.device_get(tensor_has_nan(z_nan, target_block_bytes=16 * 1024)))
    z_nan0 = z.at[0, 0].set(jnp.nan)     # NaN inside a full (fast-path) block
    assert bool(jax.device_get(tensor_has_nan(z_nan0, target_block_bytes=16 * 1024)))

    # Non-128-divisible element count: lane-dense bulk + wrapper-side tail.
    w = jax.random.normal(jax.random.PRNGKey(2), (3, 700), dtype=jnp.float32)
    assert not bool(jax.device_get(tensor_has_nan(w)))
    w_nan = w.at[2, 699].set(jnp.nan)    # NaN in the tail remainder
    assert bool(jax.device_get(tensor_has_nan(w_nan)))

    print("KERNEL_OK")
</pallas_src>

<mosaic_0001>
module attributes {stable_mosaic.version = 11 : i64} {
  func.func @_nan_flag_kernel(%arg0: i32, %arg1: memref<4x512xf32, #tpu.memory_space<vmem>>, %arg2: memref<1x8x512xi32, #tpu.memory_space<vmem>>) attributes {dimension_semantics = [#tpu.dimension_semantics<parallel>], iteration_bounds = array<i64: 1>, scalar_prefetch = 0 : i64, scratch_operands = 0 : i64, tpu.core_type = #tpu.core_type<tc>, window_params = [{transform_indices = @transform_0, window_bounds = array<i64: 4, 512>}, {transform_indices = @transform_1, window_bounds = array<i64: 1, 8, 512>}]} {
    %c0 = arith.constant 0 : index
    %c0_0 = arith.constant 0 : index
    %0 = vector.load %arg1[%c0, %c0_0] : memref<4x512xf32, #tpu.memory_space<vmem>>, vector<4x512xf32>
    %1 = arith.cmpf one, %0, %0 : vector<4x512xf32>
    %cst = arith.constant 1.000000e+00 : f32
    %cst_1 = arith.constant 0.000000e+00 : f32
    %2 = vector.broadcast %cst : f32 to vector<4x512xf32>
    %3 = vector.broadcast %cst_1 : f32 to vector<4x512xf32>
    %4 = arith.select %1, %2, %3 : vector<4x512xi1>, vector<4x512xf32>
    %5 = vector.shape_cast %4 : vector<4x512xf32> to vector<1x4x512xf32>
    %cst_2 = arith.constant dense<0xFF800000> : vector<1xf32>
    %6 = vector.multi_reduction <maximumf>, %5, %cst_2 [1, 2] : vector<1x4x512xf32> to vector<1xf32>
    %7 = vector.shape_cast %6 : vector<1xf32> to vector<1x1x1xf32>
    %8 = vector.extract %7[0, 0, 0] : f32 from vector<1x1x1xf32>
    %cst_3 = arith.constant 0.000000e+00 : f32
    %9 = arith.cmpf ogt, %8, %cst_3 : f32
    %10 = arith.extui %9 : i1 to i32
    %11 = vector.broadcast %10 : i32 to vector<1x8x512xi32>
    %c0_4 = arith.constant 0 : index
    %c0_5 = arith.constant 0 : index
    %c0_6 = arith.constant 0 : index
    %12 = vector.load %arg2[%c0_4, %c0_5, %c0_6] : memref<1x8x512xi32, #tpu.memory_space<vmem>>, vector<1x8x512xi32>
    tpu.vector_store %arg2[%c0_4, %c0_5, %c0_6], %11 {strides = array<i32>} : memref<1x8x512xi32, #tpu.memory_space<vmem>>, vector<1x8x512xi32>,
    return
  }
  func.func @transform_0(%arg0: i32) -> (i32, i32) {
    %c0_i32 = arith.constant 0 : i32
    %c0_i32_0 = arith.constant 0 : i32
    return %arg0, %c0_i32 : i32, i32
  }
  func.func @transform_1(%arg0: i32) -> (i32, i32, i32) {
    %c0_i32 = arith.constant 0 : i32
    %c0_i32_0 = arith.constant 0 : i32
    %c0_i32_1 = arith.constant 0 : i32
    return %arg0, %c0_i32, %c0_i32_0 : i32, i32, i32
  }
}

</mosaic_0001>

<bundles_post_ra>
// kernel: tensor_has_nan.1
= control target key start
LH: loop header
LB: loop body
LE: loop exit
PB: predicated region body
PF: predicated region fallthrough
CT: control target
= control target key end

     0   :  { %vm20_vm0 = vcmask 1043456   ;;  %v51_v2 = vmov 0.0   ;;  %s80_s0 = inlined_call_operand.vmem [shape: f32[4,512], index: 0, kind: input, shape index: {}]   ;;  %s81_s1 = inlined_call_operand.vmem [shape: s32[1,8,512], index: 1, kind: output, shape index: {}]  }
   0x1   :  { %v8_v0 = vld [vmem:[%s80_s0] sm:$0xff]  ;;  %v9_v1 = vld [vmem:[%s80_s0 + $0x8] sm:$0xff] }
   0x2   :  { %vm10_vm1 = vcmp.ne.f32.partialorder %v8_v0, %v8_v0  ;;  %vm11_vm2 = vcmp.ne.f32.partialorder %v9_v1, %v9_v1 }
   0x3   :  { %v12_v3 = vsel %vm10_vm1, 1.0, %v51_v2  ;;  %v13_v4 = vsel %vm11_vm2, 1.0, %v51_v2 }
   0x4   :  { %v16_v5 = vcombine.high %v12_v3, %v12_v3  ;;  %v17_v6 = vcombine.high %v13_v4, %v13_v4  ;;  %v21_v7 = vsel %vm20_vm0, %v12_v3, -inf  ;;  %v23_v8 = vsel %vm20_vm0, %v13_v4, -inf }
   0x6   :  { %v22_v9 = vsel %vm20_vm0, %v16_v5, -inf  ;;  %v24_v10 = vsel %vm20_vm0, %v17_v6, -inf }
   0x7   :  { %v25_v11 = vmax.f32 %v21_v7, %v22_v9  ;;  %v26_v12 = vmax.f32 %v23_v8, %v24_v10 }
   0x9   :  { %v27_v13 = vmax.f32 %v25_v11, %v26_v12 }
   0xb   :  { %28 = vmax.xlane.f32.xlu0 %v27_v13 }
  0x98   :  { %v29_v14 = vpop.xlane.xlu0 %28 }
  0x99   :  { %v30_v15 = vrot.slane %v29_v14, 4 }
  0x9b   :  { %v31_v16 = vmax.f32 %v29_v14, %v30_v15 }
  0x9d   :  { %v32_v17 = vrot.slane %v31_v16, 2 }
  0x9f   :  { %v33_v18 = vmax.f32 %v31_v16, %v32_v17 }
  0xa1   :  { %v34_v19 = vrot.slane %v33_v18, 1 }
  0xa3   :  { %v35_v20 = vmax.f32 %v33_v18, %v34_v19 }
  0xa5   :  { %48 = vpush %v35_v20 }
  0xd6   :  { %s49_s0 = spop %48 }
  0xd7   :  { %p37_p0 = scmp.gt.f32.partialorder %s49_s0, 0.0 }
  0xd9   :  { %s38_s10 = scalar_select %p37_p0, 1, 0 }
  0xdb   :  { %v39_v21 = vstv %s38_s10 }
  0xdc   :  { %40 = vst [vmem:[%s81_s1] sm:$0xff] %v39_v21  ;;  %41 = vst [vmem:[%s81_s1 + $0x8] sm:$0xff] %v39_v21 }
  0xdd   :  { %42 = vst [vmem:[%s81_s1 + $0x10] sm:$0xff] %v39_v21  ;;  %43 = vst [vmem:[%s81_s1 + $0x18] sm:$0xff] %v39_v21 }

</bundles_post_ra>
